<compile_context>
chip_gen: v5e
topology: v5e:2x2
jax: 0.10.0
libtpu: 0.0.40
codegen_flags: <defaults>
</compile_context>

<pallas_src>
import math

import jax
import jax.numpy as jnp
from jax.experimental import pallas as pl
from jax.experimental.pallas import tpu as pltpu


def _round_up(v: int, m: int) -> int:
    return ((v + m - 1) // m) * m


def _addressing_kernel(x_ref, wq_ref, bq_ref, wg_ref, bg_ref, ws_ref, bs_ref,
                       mem_ref, prev_ref, roll_ref, out_ref):
    """One batch tile (BT rows) of the NTM addressing head.

    x:[BT,In]  wq:[In,M] bq:[1,M]  wg:[In,1] bg:[1,1]  ws:[In,S] bs:[1,S]
    mem:[BT,N,M]  prev:[BT,N]  roll:[N,S*N]  out:[BT,N]
    """
    N = out_ref.shape[-1]
    S = bs_ref.shape[-1]

    x = x_ref[...]

    # Linear head, pre-split into (query, gate, shift): three 2D MXU dots.
    # 1/sqrt(M) is already folded into wq/bq by the wrapper.
    query = jnp.dot(x, wq_ref[...], preferred_element_type=jnp.float32) + bq_ref[...]   # [BT, M]
    gate = jax.nn.sigmoid(
        jnp.dot(x, wg_ref[...], preferred_element_type=jnp.float32) + bg_ref[...])      # [BT, 1]
    shift_dist = jax.nn.softmax(
        jnp.dot(x, ws_ref[...], preferred_element_type=jnp.float32) + bs_ref[...],
        axis=-1)                                                                         # [BT, S]

    # Content-based addressing: batched matvec on the MXU (no [BT,N,M] broadcast
    # temporary, no cross-lane reduce on the VPU/XLU path).
    mem = mem_ref[...]                                                                   # [BT, N, M]
    scores = jnp.einsum('bkm,bnm->bkn', query[:, None, :], mem,
                        preferred_element_type=jnp.float32)[:, 0, :]                     # [BT, N]
    content = jax.nn.softmax(scores, axis=-1)                                            # [BT, N]

    # Gated interpolation with the previous addressing.
    interp = gate * content + (1.0 - gate) * prev_ref[...]                               # [BT, N]

    # Circular shift-convolution as a single 2D matmul with a constant roll matrix:
    #   rolled[b, s*N + n] = interp[b, (n + s - max_shift) % N]
    rolled = jnp.dot(interp, roll_ref[...], preferred_element_type=jnp.float32)          # [BT, S*N]
    shifted = jnp.zeros_like(interp)
    for s in range(S):  # S = 2*max_shift + 1 is tiny; static unroll
        shifted = shifted + shift_dist[:, s:s + 1] * rolled[:, s * N:(s + 1) * N]

    # TODO(synk): output is only N lanes wide (masked vst); if N grows or many
    # timesteps are batched, switch to a lane-dense output layout (pad N to 128 or
    # put the batched axis last) and alias memory/prev via input_output_aliases
    # when carried recurrently.
    out_ref[...] = shifted.astype(out_ref.dtype)


def prepare_addressing_params(w, b, *, memory_bank_size: int, max_shift: int, num_banks: int):
    """Split the fused Linear params, fold the 1/sqrt(M) content scale into the
    query columns, and build the constant circular-shift matrix."""
    M = memory_bank_size
    S = 2 * max_shift + 1
    N = num_banks
    inv_sqrt_m = 1.0 / math.sqrt(M)

    wq = w[:, :M] * inv_sqrt_m
    bq = b[:, :M] * inv_sqrt_m
    wg = w[:, M:M + 1]
    bg = b[:, M:M + 1]
    ws = w[:, M + 1:M + 1 + S]
    bs = b[:, M + 1:M + 1 + S]

    # roll_mat[m, s*N + n] = 1  iff  m == (n + s - max_shift) % N
    n_idx = jnp.arange(N)
    src = (n_idx[None, :] + (jnp.arange(S) - max_shift)[:, None]) % N        # [S, N]
    roll_mat = (jnp.arange(N)[:, None, None] == src[None, :, :]).astype(jnp.float32)
    roll_mat = roll_mat.reshape(N, S * N)
    return wq, bq, wg, bg, ws, bs, roll_mat


def addressing_head_pallas(x, w, b, memory, prev, *, memory_bank_size: int,
                           max_shift: int, block_b: int = 128):
    B, input_size = x.shape
    N, M = memory.shape[1], memory.shape[2]
    wq, bq, wg, bg, ws, bs, roll_mat = prepare_addressing_params(
        w, b, memory_bank_size=memory_bank_size, max_shift=max_shift, num_banks=N)

    # Batch tiling: one grid step handles up to `block_b` rows (multiple of 8 for
    # sublane alignment); the batch axis is "parallel" (shards across TCs on v7x).
    bt = min(block_b, _round_up(B, 8))
    b_pad = _round_up(B, bt)
    if b_pad != B:
        pad = b_pad - B
        x = jnp.pad(x, ((0, pad), (0, 0)))
        memory = jnp.pad(memory, ((0, pad), (0, 0), (0, 0)))
        prev = jnp.pad(prev, ((0, pad), (0, 0)))

    out = pl.pallas_call(
        _addressing_kernel,
        out_shape=jax.ShapeDtypeStruct((b_pad, N), jnp.float32),
        grid_spec=pltpu.PrefetchScalarGridSpec(
            num_scalar_prefetch=0,
            grid=(b_pad // bt,),
            in_specs=[
                pl.BlockSpec((bt, input_size), lambda i: (i, 0)),   # x
                pl.BlockSpec(wq.shape, lambda i: (0, 0)),           # wq (resident)
                pl.BlockSpec(bq.shape, lambda i: (0, 0)),           # bq
                pl.BlockSpec(wg.shape, lambda i: (0, 0)),           # wg
                pl.BlockSpec(bg.shape, lambda i: (0, 0)),           # bg
                pl.BlockSpec(ws.shape, lambda i: (0, 0)),           # ws
                pl.BlockSpec(bs.shape, lambda i: (0, 0)),           # bs
                pl.BlockSpec((bt, N, M), lambda i: (i, 0, 0)),      # memory
                pl.BlockSpec((bt, N), lambda i: (i, 0)),            # previous addressing
                pl.BlockSpec(roll_mat.shape, lambda i: (0, 0)),     # roll matrix
            ],
            out_specs=pl.BlockSpec((bt, N), lambda i: (i, 0)),
        ),
        compiler_params=pltpu.CompilerParams(dimension_semantics=("parallel",)),
    )(x, wq, bq, wg, bg, ws, bs, memory, prev, roll_mat)
    return out[:B]


def addressing_head_ref(x, w, b, memory, prev, *, memory_bank_size: int, max_shift: int):
    """Pure-JAX reference mirroring the PyTorch forward exactly."""
    M = memory_bank_size
    S = 2 * max_shift + 1
    args = x @ w + b
    query = args[:, :M]
    query_gate = jax.nn.sigmoid(args[:, M:M + 1])
    shift_dist = jax.nn.softmax(args[:, M + 1:M + 1 + S], axis=1)
    content = jax.nn.softmax(
        jnp.squeeze(memory @ query[:, :, None], -1) / math.sqrt(memory.shape[2]), axis=1)
    interp = query_gate * content + (1.0 - query_gate) * prev
    N = prev.shape[1]
    bank_idx = jnp.arange(N)
    offsets = jnp.arange(S) - max_shift
    idx_table = (bank_idx[:, None] + offsets[None, :]) % N
    shifted = jnp.sum(shift_dist[:, None, :] * interp[:, idx_table], axis=2)
    return shifted


if __name__ == "__main__":
    B = 2
    input_size = 32
    memory_bank_size = 16   # M
    num_banks = 8           # N
    max_shift = 1           # S = 3
    A = memory_bank_size + 1 + (2 * max_shift + 1)

    key = jax.random.PRNGKey(0)
    k_x, k_mem, k_prev, k_w, k_b = jax.random.split(key, 5)

    x = jax.random.normal(k_x, (B, input_size), dtype=jnp.float32)
    memory = jax.random.normal(k_mem, (B, num_banks, memory_bank_size), dtype=jnp.float32)
    prev_logits = jax.random.normal(k_prev, (B, num_banks), dtype=jnp.float32)
    previous_addressing = jax.nn.softmax(prev_logits, axis=1)

    bound = 1.0 / math.sqrt(input_size)
    w = jax.random.uniform(k_w, (input_size, A), minval=-bound, maxval=bound, dtype=jnp.float32)
    b = jax.random.uniform(k_b, (1, A), minval=-bound, maxval=bound, dtype=jnp.float32)

    out = addressing_head_pallas(x, w, b, memory, previous_addressing,
                                 memory_bank_size=memory_bank_size, max_shift=max_shift)
    out = jax.block_until_ready(out)

    ref = addressing_head_ref(x, w, b, memory, previous_addressing,
                              memory_bank_size=memory_bank_size, max_shift=max_shift)
    assert out.shape == (B, num_banks)
    assert jnp.allclose(out, ref, atol=1e-5, rtol=1e-5), "Pallas output mismatch vs reference"

    print("KERNEL_OK")
</pallas_src>

<mosaic_0001>
module attributes {stable_mosaic.version = 11 : i64} {
  func.func @_addressing_kernel(%arg0: i32, %arg1: memref<8x32xf32, #tpu.memory_space<vmem>>, %arg2: memref<32x16xf32, #tpu.memory_space<vmem>>, %arg3: memref<1x16xf32, #tpu.memory_space<vmem>>, %arg4: memref<32x1xf32, #tpu.memory_space<vmem>>, %arg5: memref<1x1xf32, #tpu.memory_space<vmem>>, %arg6: memref<32x3xf32, #tpu.memory_space<vmem>>, %arg7: memref<1x3xf32, #tpu.memory_space<vmem>>, %arg8: memref<8x8x16xf32, #tpu.memory_space<vmem>>, %arg9: memref<8x8xf32, #tpu.memory_space<vmem>>, %arg10: memref<8x24xf32, #tpu.memory_space<vmem>>, %arg11: memref<8x8xf32, #tpu.memory_space<vmem>>) attributes {dimension_semantics = [#tpu.dimension_semantics<parallel>], iteration_bounds = array<i64: 1>, scalar_prefetch = 0 : i64, scratch_operands = 0 : i64, tpu.core_type = #tpu.core_type<tc>, window_params = [{transform_indices = @transform_0, window_bounds = array<i64: 8, 32>}, {pipeline_mode = #tpu.pipeline_mode<synchronous>, transform_indices = @transform_1, window_bounds = array<i64: 32, 16>}, {pipeline_mode = #tpu.pipeline_mode<synchronous>, transform_indices = @transform_2, window_bounds = array<i64: 1, 16>}, {pipeline_mode = #tpu.pipeline_mode<synchronous>, transform_indices = @transform_3, window_bounds = array<i64: 32, 1>}, {pipeline_mode = #tpu.pipeline_mode<synchronous>, transform_indices = @transform_4, window_bounds = array<i64: 1, 1>}, {pipeline_mode = #tpu.pipeline_mode<synchronous>, transform_indices = @transform_5, window_bounds = array<i64: 32, 3>}, {pipeline_mode = #tpu.pipeline_mode<synchronous>, transform_indices = @transform_6, window_bounds = array<i64: 1, 3>}, {transform_indices = @transform_7, window_bounds = array<i64: 8, 8, 16>}, {transform_indices = @transform_8, window_bounds = array<i64: 8, 8>}, {pipeline_mode = #tpu.pipeline_mode<synchronous>, transform_indices = @transform_9, window_bounds = array<i64: 8, 24>}, {transform_indices = @transform_10, window_bounds = array<i64: 8, 8>}]} {
    %c0 = arith.constant 0 : index
    %c0_0 = arith.constant 0 : index
    %0 = vector.load %arg1[%c0, %c0_0] : memref<8x32xf32, #tpu.memory_space<vmem>>, vector<8x32xf32>
    %c0_1 = arith.constant 0 : index
    %c0_2 = arith.constant 0 : index
    %1 = vector.load %arg2[%c0_1, %c0_2] : memref<32x16xf32, #tpu.memory_space<vmem>>, vector<32x16xf32>
    %cst = arith.constant dense<0.000000e+00> : vector<8x16xf32>
    %2 = tpu.matmul %0, %1, %cst {dimension_numbers = #tpu.dot_dimension_numbers<[1], [0], [0], [1], [0, 0, 1, 1], [], []>} : vector<8x32xf32>, vector<32x16xf32>, vector<8x16xf32> -> vector<8x16xf32>
    %c0_3 = arith.constant 0 : index
    %c0_4 = arith.constant 0 : index
    %3 = vector.load %arg3[%c0_3, %c0_4] : memref<1x16xf32, #tpu.memory_space<vmem>>, vector<1x16xf32>
    %4 = vector.broadcast %3 : vector<1x16xf32> to vector<8x16xf32>
    %5 = arith.addf %2, %4 : vector<8x16xf32>
    %c0_5 = arith.constant 0 : index
    %c0_6 = arith.constant 0 : index
    %6 = vector.load %arg4[%c0_5, %c0_6] : memref<32x1xf32, #tpu.memory_space<vmem>>, vector<32x1xf32>
    %cst_7 = arith.constant dense<0.000000e+00> : vector<8x1xf32>
    %7 = tpu.matmul %0, %6, %cst_7 {dimension_numbers = #tpu.dot_dimension_numbers<[1], [0], [0], [1], [0, 0, 1, 1], [], []>} : vector<8x32xf32>, vector<32x1xf32>, vector<8x1xf32> -> vector<8x1xf32>
    %c0_8 = arith.constant 0 : index
    %c0_9 = arith.constant 0 : index
    %8 = vector.load %arg5[%c0_8, %c0_9] : memref<1x1xf32, #tpu.memory_space<vmem>>, vector<1x1xf32>
    %9 = vector.broadcast %8 : vector<1x1xf32> to vector<8x1xf32>
    %10 = arith.addf %7, %9 : vector<8x1xf32>
    %11 = arith.negf %10 : vector<8x1xf32>
    %12 = math.exp %11 : vector<8x1xf32>
    %cst_10 = arith.constant 1.000000e+00 : f32
    %13 = vector.broadcast %cst_10 : f32 to vector<8x1xf32>
    %14 = arith.addf %13, %12 : vector<8x1xf32>
    %15 = arith.divf %13, %14 : vector<8x1xf32>
    %c0_11 = arith.constant 0 : index
    %c0_12 = arith.constant 0 : index
    %16 = vector.load %arg6[%c0_11, %c0_12] : memref<32x3xf32, #tpu.memory_space<vmem>>, vector<32x3xf32>
    %cst_13 = arith.constant dense<0.000000e+00> : vector<8x3xf32>
    %17 = tpu.matmul %0, %16, %cst_13 {dimension_numbers = #tpu.dot_dimension_numbers<[1], [0], [0], [1], [0, 0, 1, 1], [], []>} : vector<8x32xf32>, vector<32x3xf32>, vector<8x3xf32> -> vector<8x3xf32>
    %c0_14 = arith.constant 0 : index
    %c0_15 = arith.constant 0 : index
    %18 = vector.load %arg7[%c0_14, %c0_15] : memref<1x3xf32, #tpu.memory_space<vmem>>, vector<1x3xf32>
    %19 = vector.broadcast %18 : vector<1x3xf32> to vector<8x3xf32>
    %20 = arith.addf %17, %19 : vector<8x3xf32>
    %cst_16 = arith.constant dense<0xFF800000> : vector<8xf32>
    %21 = vector.multi_reduction <maximumf>, %20, %cst_16 [1] : vector<8x3xf32> to vector<8xf32>
    %cst_17 = arith.constant 0xFF800000 : f32
    %22 = vector.broadcast %cst_17 : f32 to vector<8xf32>
    %23 = arith.maximumf %22, %21 : vector<8xf32>
    %24 = vector.shape_cast %23 : vector<8xf32> to vector<8x1xf32>
    %25 = vector.broadcast %24 : vector<8x1xf32> to vector<8x3xf32>
    %26 = arith.subf %20, %25 : vector<8x3xf32>
    %27 = math.exp %26 : vector<8x3xf32>
    %cst_18 = arith.constant dense<0.000000e+00> : vector<8xf32>
    %28 = vector.multi_reduction <add>, %27, %cst_18 [1] : vector<8x3xf32> to vector<8xf32>
    %29 = vector.shape_cast %28 : vector<8xf32> to vector<8x1xf32>
    %30 = vector.broadcast %29 : vector<8x1xf32> to vector<8x3xf32>
    %31 = arith.divf %27, %30 : vector<8x3xf32>
    %c0_19 = arith.constant 0 : index
    %c0_20 = arith.constant 0 : index
    %c0_21 = arith.constant 0 : index
    %32 = vector.load %arg8[%c0_19, %c0_20, %c0_21] : memref<8x8x16xf32, #tpu.memory_space<vmem>>, vector<8x8x16xf32>
    %33 = vector.shape_cast %5 : vector<8x16xf32> to vector<8x1x16xf32>
    "tpu.trace_start"() <{level = 10 : i32, message = "bkm,bnm->bkn"}> : () -> ()
    %cst_22 = arith.constant dense<0.000000e+00> : vector<8x1x8xf32>
    %34 = tpu.matmul %33, %32, %cst_22 {dimension_numbers = #tpu.dot_dimension_numbers<[2], [2], [1], [1], [0, 0, 0, 1, 1, 1], [0], [0]>} : vector<8x1x16xf32>, vector<8x8x16xf32>, vector<8x1x8xf32> -> vector<8x1x8xf32>
    "tpu.trace_stop"() : () -> ()
    %35 = vector.shape_cast %34 : vector<8x1x8xf32> to vector<8x8xf32>
    %cst_23 = arith.constant dense<0xFF800000> : vector<8xf32>
    %36 = vector.multi_reduction <maximumf>, %35, %cst_23 [1] : vector<8x8xf32> to vector<8xf32>
    %cst_24 = arith.constant 0xFF800000 : f32
    %37 = vector.broadcast %cst_24 : f32 to vector<8xf32>
    %38 = arith.maximumf %37, %36 : vector<8xf32>
    %39 = vector.shape_cast %38 : vector<8xf32> to vector<8x1xf32>
    %40 = vector.broadcast %39 : vector<8x1xf32> to vector<8x8xf32>
    %41 = arith.subf %35, %40 : vector<8x8xf32>
    %42 = math.exp %41 : vector<8x8xf32>
    %cst_25 = arith.constant dense<0.000000e+00> : vector<8xf32>
    %43 = vector.multi_reduction <add>, %42, %cst_25 [1] : vector<8x8xf32> to vector<8xf32>
    %44 = vector.shape_cast %43 : vector<8xf32> to vector<8x1xf32>
    %45 = vector.broadcast %44 : vector<8x1xf32> to vector<8x8xf32>
    %46 = arith.divf %42, %45 : vector<8x8xf32>
    %47 = vector.broadcast %15 : vector<8x1xf32> to vector<8x8xf32>
    %48 = arith.mulf %47, %46 : vector<8x8xf32>
    %cst_26 = arith.constant 1.000000e+00 : f32
    %49 = vector.broadcast %cst_26 : f32 to vector<8x1xf32>
    %50 = arith.subf %49, %15 : vector<8x1xf32>
    %c0_27 = arith.constant 0 : index
    %c0_28 = arith.constant 0 : index
    %51 = vector.load %arg9[%c0_27, %c0_28] : memref<8x8xf32, #tpu.memory_space<vmem>>, vector<8x8xf32>
    %52 = vector.broadcast %50 : vector<8x1xf32> to vector<8x8xf32>
    %53 = arith.mulf %52, %51 : vector<8x8xf32>
    %54 = arith.addf %48, %53 : vector<8x8xf32>
    %c0_29 = arith.constant 0 : index
    %c0_30 = arith.constant 0 : index
    %55 = vector.load %arg10[%c0_29, %c0_30] : memref<8x24xf32, #tpu.memory_space<vmem>>, vector<8x24xf32>
    %cst_31 = arith.constant dense<0.000000e+00> : vector<8x24xf32>
    %56 = tpu.matmul %54, %55, %cst_31 {dimension_numbers = #tpu.dot_dimension_numbers<[1], [0], [0], [1], [0, 0, 1, 1], [], []>} : vector<8x8xf32>, vector<8x24xf32>, vector<8x24xf32> -> vector<8x24xf32>
    %cst_32 = arith.constant 0.000000e+00 : f32
    %57 = vector.broadcast %cst_32 : f32 to vector<8x8xf32>
    %58 = vector.extract_strided_slice %31 {offsets = [0, 0], sizes = [8, 1], strides = [1, 1]} : vector<8x3xf32> to vector<8x1xf32>
    %59 = vector.extract_strided_slice %56 {offsets = [0, 0], sizes = [8, 8], strides = [1, 1]} : vector<8x24xf32> to vector<8x8xf32>
    %60 = vector.broadcast %58 : vector<8x1xf32> to vector<8x8xf32>
    %61 = arith.mulf %60, %59 : vector<8x8xf32>
    %62 = arith.addf %57, %61 : vector<8x8xf32>
    %63 = vector.extract_strided_slice %31 {offsets = [0, 1], sizes = [8, 1], strides = [1, 1]} : vector<8x3xf32> to vector<8x1xf32>
    %64 = vector.extract_strided_slice %56 {offsets = [0, 8], sizes = [8, 8], strides = [1, 1]} : vector<8x24xf32> to vector<8x8xf32>
    %65 = vector.broadcast %63 : vector<8x1xf32> to vector<8x8xf32>
    %66 = arith.mulf %65, %64 : vector<8x8xf32>
    %67 = arith.addf %62, %66 : vector<8x8xf32>
    %68 = vector.extract_strided_slice %31 {offsets = [0, 2], sizes = [8, 1], strides = [1, 1]} : vector<8x3xf32> to vector<8x1xf32>
    %69 = vector.extract_strided_slice %56 {offsets = [0, 16], sizes = [8, 8], strides = [1, 1]} : vector<8x24xf32> to vector<8x8xf32>
    %70 = vector.broadcast %68 : vector<8x1xf32> to vector<8x8xf32>
    %71 = arith.mulf %70, %69 : vector<8x8xf32>
    %72 = arith.addf %67, %71 : vector<8x8xf32>
    %c0_33 = arith.constant 0 : index
    %c0_34 = arith.constant 0 : index
    %73 = vector.load %arg11[%c0_33, %c0_34] : memref<8x8xf32, #tpu.memory_space<vmem>>, vector<8x8xf32>
    tpu.vector_store %arg11[%c0_33, %c0_34], %72 {strides = array<i32>} : memref<8x8xf32, #tpu.memory_space<vmem>>, vector<8x8xf32>,
    return
  }
  func.func @transform_0(%arg0: i32) -> (i32, i32) {
    %c0_i32 = arith.constant 0 : i32
    %c0_i32_0 = arith.constant 0 : i32
    return %arg0, %c0_i32 : i32, i32
  }
  func.func @transform_1(%arg0: i32) -> (i32, i32) {
    %c0_i32 = arith.constant 0 : i32
    %c0_i32_0 = arith.constant 0 : i32
    %c0_i32_1 = arith.constant 0 : i32
    return %c0_i32, %c0_i32_0 : i32, i32
  }
  func.func @transform_2(%arg0: i32) -> (i32, i32) {
    %c0_i32 = arith.constant 0 : i32
    %c0_i32_0 = arith.constant 0 : i32
    %c0_i32_1 = arith.constant 0 : i32
    return %c0_i32, %c0_i32_0 : i32, i32
  }
  func.func @transform_3(%arg0: i32) -> (i32, i32) {
    %c0_i32 = arith.constant 0 : i32
    %c0_i32_0 = arith.constant 0 : i32
    %c0_i32_1 = arith.constant 0 : i32
    return %c0_i32, %c0_i32_0 : i32, i32
  }
  func.func @transform_4(%arg0: i32) -> (i32, i32) {
    %c0_i32 = arith.constant 0 : i32
    %c0_i32_0 = arith.constant 0 : i32
    %c0_i32_1 = arith.constant 0 : i32
    return %c0_i32, %c0_i32_0 : i32, i32
  }
  func.func @transform_5(%arg0: i32) -> (i32, i32) {
    %c0_i32 = arith.constant 0 : i32
    %c0_i32_0 = arith.constant 0 : i32
    %c0_i32_1 = arith.constant 0 : i32
    return %c0_i32, %c0_i32_0 : i32, i32
  }
  func.func @transform_6(%arg0: i32) -> (i32, i32) {
    %c0_i32 = arith.constant 0 : i32
    %c0_i32_0 = arith.constant 0 : i32
    %c0_i32_1 = arith.constant 0 : i32
    return %c0_i32, %c0_i32_0 : i32, i32
  }
  func.func @transform_7(%arg0: i32) -> (i32, i32, i32) {
    %c0_i32 = arith.constant 0 : i32
    %c0_i32_0 = arith.constant 0 : i32
    %c0_i32_1 = arith.constant 0 : i32
    return %arg0, %c0_i32, %c0_i32_0 : i32, i32, i32
  }
  func.func @transform_8(%arg0: i32) -> (i32, i32) {
    %c0_i32 = arith.constant 0 : i32
    %c0_i32_0 = arith.constant 0 : i32
    return %arg0, %c0_i32 : i32, i32
  }
  func.func @transform_9(%arg0: i32) -> (i32, i32) {
    %c0_i32 = arith.constant 0 : i32
    %c0_i32_0 = arith.constant 0 : i32
    %c0_i32_1 = arith.constant 0 : i32
    return %c0_i32, %c0_i32_0 : i32, i32
  }
  func.func @transform_10(%arg0: i32) -> (i32, i32) {
    %c0_i32 = arith.constant 0 : i32
    %c0_i32_0 = arith.constant 0 : i32
    return %arg0, %c0_i32 : i32, i32
  }
}

</mosaic_0001>

<bundles_post_ra>
// kernel: tpu_custom_call.1
= control target key start
LH: loop header
LB: loop body
LE: loop exit
PB: predicated region body
PF: predicated region fallthrough
CT: control target
= control target key end

     0   :  { %s1163_s0 = inlined_call_operand.vmem [shape: f32[8,32], index: 0, kind: input, shape index: {}]   ;;  %s1164_s1 = inlined_call_operand.vmem [shape: f32[32,16], index: 1, kind: input, shape index: {}]   ;;  %s1165_s2 = inlined_call_operand.vmem [shape: f32[1,16], index: 2, kind: input, shape index: {}]   ;;  %s1166_s3 = inlined_call_operand.vmem [shape: f32[32,1], index: 3, kind: input, shape index: {}]   ;;  %s1167_s4 = inlined_call_operand.<no memory space> [shape: f32[1,1], index: 4, kind: input, shape index: {}]   ;;  %s1168_s5 = inlined_call_operand.vmem [shape: f32[32,3], index: 5, kind: input, shape index: {}]   ;;  %s1169_s6 = inlined_call_operand.vmem [shape: f32[1,3], index: 6, kind: input, shape index: {}]   ;;  %s1170_s7 = inlined_call_operand.vmem [shape: f32[8,8,16], index: 7, kind: input, shape index: {}]   ;;  %s1171_s8 = inlined_call_operand.vmem [shape: f32[8,8], index: 8, kind: input, shape index: {}]   ;;  %s1172_s9 = inlined_call_operand.vmem [shape: f32[8,24], index: 9, kind: input, shape index: {}]   ;;  %s1173_s10 = inlined_call_operand.hbm [shape: f32[8,8], index: 10, kind: output, shape index: {}]  }
   0x1   :  { %v15_v0 = vstv %s1167_s4 }
   0x2   :  { %16 = vst [vmem:[#allocation2] sm:$0x1] %v15_v0 }
   0x3   :  { %v42_v1 = vld [vmem:[%s1164_s1 + $0x18] sm:$0xff]  ;;  %v41_v3 = vld [vmem:[%s1164_s1 + $0x10] sm:$0xff]  ;;  %v40_v5 = vld [vmem:[%s1164_s1 + $0x8] sm:$0xff]  ;;  %vm47_vm0 = vcmask 261120  }
   0x4   :  { %v121_v2 = vld [vmem:[%s1168_s5 + $0x18] sm:$0xff]  ;;  %63 = vmatpush.msra.mxu0 %v42_v1  ;;  %v120_v4 = vld [vmem:[%s1168_s5 + $0x10] sm:$0xff]  ;;  %v119_v6 = vld [vmem:[%s1168_s5 + $0x8] sm:$0xff] }
   0x5   :  { %138 = vmatpush.msra.mxu2 %v121_v2  ;;  %v39_v7 = vld [vmem:[%s1164_s1] sm:$0xff]  ;;  %v74_v8 = vld [vmem:[%s1166_s3 + $0x18] sm:$0xff]  ;;  %v73_v9 = vld [vmem:[%s1166_s3 + $0x10] sm:$0xff] }
   0x6   :  { %64 = vmatpush.msra.mxu0 %v41_v3  ;;  %v118_v10 = vld [vmem:[%s1168_s5] sm:$0xff]  ;;  %91 = vmatpush.msra.mxu1 %v74_v8 }
   0x7   :  { %139 = vmatpush.msra.mxu2 %v120_v4  ;;  %v38_v11 = vld [vmem:[%s1163_s0] sm:$0xff] }
   0x8   :  { %65 = vmatpush.msra.mxu0 %v40_v5 }
   0x9   :  { %140 = vmatpush.msra.mxu2 %v119_v6 }
   0xa   :  { %17 = vsyncpa [#allocation4], 0  ;;  %92 = vmatpush.msra.mxu1 %v73_v9  ;;  %v72_v12 = vld [vmem:[%s1166_s3 + $0x8] sm:$0xff]  ;;  %66 = vmatpush.msra.mxu0 %v39_v7  ;;  %v71_v13 = vld [vmem:[%s1166_s3] sm:$0xff]  ;;  %vm187_vm1 = vcmask 130048   ;;  %vm146_vm2 = vcmask 23552  }
   0xb   :  { %141 = vmatpush.msra.mxu2 %v118_v10  ;;  %730 = vmatmul.msk.f32.vlgmr.msra.gmra.mxu0 %vm47_vm0, %v38_v11  ;;  %v171_v14 = vld [vmem:[%s1170_s7] sm:$0xff]  ;;  %v173_v15 = vld [vmem:[%s1170_s7 + $0x10] sm:$0xff]  ;;  %v174_v16 = vld [vmem:[%s1170_s7 + $0x18] sm:$0xff]  ;;  %v831_v50 = vmov 0   ;;  %vm397_vm7 = vcmask 1041409   ;;  %vm400_vm8 = vcmask 1042434  }
   0xc   :  { %733 = vmatmul.msk.f32.vlgmr.msra.gmra.mxu2 %vm47_vm0, %v38_v11  ;;  %93 = vmatpush.msra.mxu1 %v72_v12  ;;  %v175_v17 = vld [vmem:[%s1170_s7 + $0x20] sm:$0xff]  ;;  %v172_v18 = vld [vmem:[%s1170_s7 + $0x8] sm:$0xff]  ;;  %v177_v19 = vld [vmem:[%s1170_s7 + $0x30] sm:$0xff]  ;;  %vm403_vm9 = vcmask 1043459   ;;  %vm1178_vm10 = vcmask 1044484   ;;  %vm1177_vm11 = vcmask 1045509  }
   0xd   :  { %734 = vmatpush.xpose.msk.msra.mxu3 %vm187_vm1, %v171_v14  ;;  %738 = vmatpush.xpose.msk.msrb.mxu0 %vm187_vm1, %v173_v15  ;;  %v178_v20 = vld [vmem:[%s1170_s7 + $0x38] sm:$0xff]  ;;  %v762_v21 = vld [vmem:[%s1165_s2] ss:$0 sm:$0xff]  ;;  %v176_v24 = vld [vmem:[%s1170_s7 + $0x28] sm:$0xff]  ;;  %vm1176_vm12 = vcmask 1046534   ;;  %vm1175_vm13 = vcmask 1047559  }
   0xe   :  { %94 = vmatpush.msra.mxu1 %v71_v13  ;;  %742 = vmatpush.xpose.msk.msrb.mxu2 %vm187_vm1, %v175_v17  ;;  %v763_v28 = vld [vmem:[%s1169_s6] ss:$0 sm:$0xff]  ;;  %vm1174_vm14 = vcmask 64512   ;;  %s834_s15 = smov 120   ;;  %s835_s1 = smov 112  }
   0xf   :  { %731 = vmatmul.msk.f32.vlgmr.msra.gmra.mxu1 %vm47_vm0, %v38_v11  ;;  %v764_v36 = vld [vmem:[#allocation2] ss:$0 sm:$0xff]  ;;  %757 = vset.pattern.permute.xlu1 %v831_v50  ;;  %s721_s0 = sshll.u32 %s1173_s10, 4  ;;  %s722_s0 = int_to_ptr.hbm [resolvable:$true] %s721_s0 }
  0x10   :  { %740 = vmatpush.xpose.msk.msrb.mxu1 %vm187_vm1, %v174_v16  ;;  %760 = vset.pattern.permute.xlu2 %v831_v50 }
  0x11   :  { %736 = vmatpush.xpose.msk.msrb.mxu3 %vm187_vm1, %v172_v18  ;;  %746 = vmatpush.xpose.msk.msra.mxu0 %vm187_vm1, %v177_v19  ;;  %v832_v18 = vmov 2  }
  0x14   :  { %748 = vmatpush.xpose.msk.msra.mxu1 %vm187_vm1, %v178_v20 }
  0x88   :  { %v68_v22 = vpop.f32.mrf.mxu0 }
  0x89   :  { %v69_v23 = vadd.f32 %v762_v21, %v68_v22 }
  0x8b   :  { %735 = vmatmul.msk.f32.vlgmr.msra.gmra.mxu3 %vm187_vm1, %v69_v23  ;;  %v181_v25 = vrot.slane %v69_v23, 2  ;;  %v182_v26 = vrot.slane %v69_v23, 3  ;;  %v183_v27 = vrot.slane %v69_v23, 4  ;;  %v180_v32 = vrot.slane %v69_v23, 1 }
  0x8c   :  { %744 = vmatpush.xpose.msk.msra.mxu3 %vm187_vm1, %v176_v24  ;;  %v185_v33 = vrot.slane %v69_v23, 6  ;;  %v186_v34 = vrot.slane %v69_v23, 7  ;;  %v184_v35 = vrot.slane %v69_v23, 5  ;;  %v96_v37 = vpop.f32.mrf.mxu1 }
  0x8d   :  { %739 = vmatmul.msk.f32.vlgmr.msrb.gmra.mxu0 %vm187_vm1, %v181_v25  ;;  %741 = vmatmul.msk.f32.vlgmr.msrb.gmra.mxu1 %vm187_vm1, %v182_v26  ;;  %v97_v38 = vadd.f32 %v764_v36, %v96_v37  ;;  %v833_v26 = vmov 1  }
  0x8e   :  { %743 = vmatmul.msk.f32.vlgmr.msrb.gmra.mxu2 %vm187_vm1, %v183_v27  ;;  %758 = vset.pattern.permute.xlu0 %v833_v26 }
  0x8f   :  { %v143_v29 = vpop.f32.mrf.mxu2  ;;  %v732_v39 = vmul.f32 -1.442695, %v97_v38 }
  0x90   :  { %v144_v30 = vadd.f32 %v763_v28, %v143_v29 }
  0x91   :  { %765 = vpow2.f32 %v732_v39 }
  0x92   :  { %v147_v31 = vsel %vm146_vm2, %v144_v30, -inf }
  0x93   :  { %148 = vmax.xlane.f32.xlu2 %v147_v31  ;;  %737 = vmatmul.msk.f32.vlgmr.msrb.gmra.mxu3 %vm187_vm1, %v180_v32 }
  0x95   :  { %747 = vmatmul.msk.f32.vlgmr.msra.gmra.mxu0 %vm187_vm1, %v185_v33  ;;  %749 = vmatmul.msk.f32.vlgmr.msra.gmra.mxu1 %vm187_vm1, %v186_v34 }
  0x97   :  { %v766_v40 = vpop.eup %765 }
  0x98   :  { %v102_v41 = vadd.f32 1.0, %v766_v40 }
  0x9a   :  { %767 = vrcp.f32 %v102_v41  ;;  %v114_v46 = vand.u32 2147483648, %v102_v41  ;;  %vm108_vm3 = vweird.f32 %v102_v41  ;;  %v112_v48 = vand.u32 2147483647, %v102_v41 }
  0x9b   :  { %745 = vmatmul.msk.f32.vlgmr.msra.gmra.mxu3 %vm187_vm1, %v184_v35 }
  0x9c   :  { %v115_v49 = vor.u32 1.1754944e-38, %v114_v46  ;;  %vm113_vm6 = vcmp.eq.f32.partialorder %v112_v48, 8.507059e+37 }
  0xa0   :  { %v768_v42 = vpop.eup %767 }
  0xa1   :  { %v104_v43 = vmul.f32 %v768_v42, %v102_v41  ;;  %vm109_vm4 = vweird.f32 %v768_v42 }
  0xa2   :  { %vm110_vm5 = vmor %vm108_vm3, %vm109_vm4 }
  0xa3   :  { %v105_v44 = vsub.f32 1.0, %v104_v43 }
  0xa5   :  { %v106_v45 = vmul.f32 %v768_v42, %v105_v44 }
  0xa7   :  { %v107_v47 = vadd.f32 %v768_v42, %v106_v45 }
  0xa9   :  { %v111_v51 = vsel %vm110_vm5, %v768_v42, %v107_v47 }
  0xaa   :  { %v116_v52 = vsel %vm113_vm6, %v115_v49, %v111_v51 }
  0xab   :  { %626 = vperm.xlu1 %757, %v116_v52   ;;  %v653_v53 = vsub.f32 1.0, %v116_v52 }
  0xb3   :  { %657 = vperm.xlu1 %757, %v653_v53  }
  0xbb   :  { %759 = vset.pattern.permute.xlu1 %v832_v18 }
 0x106   :  { %v149_v54 = vpop.xlane.xlu2 %148 }
 0x107   :  { %v150_v55 = vsub.f32 %v144_v30, %v149_v54 }
 0x109   :  { %v151_v56 = vmul.f32 1.442695, %v150_v55 }
 0x10a   :  { %v984_v60 = vpop.f32.mrf.mxu0  ;;  %v986_v61 = vpop.f32.mrf.mxu1 }
 0x10b   :  { %769 = vpow2.f32 %v151_v56  ;;  %v399_v0 = vrot.slane %v984_v60, 6  ;;  %v402_v3 = vrot.slane %v986_v61, 5 }
 0x10e   :  { %v981_v57 = vpop.f32.mrf.mxu3 }
 0x111   :  { %v770_v58 = vpop.eup %769  ;;  %v310_v4 = vpop.f32.mrf.mxu2 }
 0x112   :  { %v153_v59 = vsel %vm146_vm2, %v770_v58, 0.0  ;;  %v360_v5 = vpop.f32.mrf.mxu0  ;;  %v405_v7 = vrot.slane %v310_v4, 4  ;;  %v385_v8 = vpop.f32.mrf.mxu1 }
 0x113   :  { %154 = vadd.xlane.f32.xlu2 %v153_v59  ;;  %v411_v11 = vrot.slane %v360_v5, 2  ;;  %v414_v13 = vrot.slane %v385_v8, 1 }
 0x116   :  { %v235_v62 = vpop.f32.mrf.mxu3 }
 0x117   :  { %v396_v63 = vrot.slane %v235_v62, 7 }
 0x119   :  { %v398_v1 = vsel %vm397_vm7, %v396_v63, %v981_v57 }
 0x11a   :  { %v401_v2 = vsel %vm400_vm8, %v399_v0, %v398_v1 }
 0x11b   :  { %v404_v6 = vsel %vm403_vm9, %v402_v3, %v401_v2 }
 0x11c   :  { %v407_v12 = vsel %vm1178_vm10, %v405_v7, %v404_v6 }
 0x11e   :  { %v335_v9 = vpop.f32.mrf.mxu3 }
 0x11f   :  { %v408_v10 = vrot.slane %v335_v9, 3 }
 0x121   :  { %v410_v14 = vsel %vm1177_vm11, %v408_v10, %v407_v12 }
 0x122   :  { %v413_v15 = vsel %vm1176_vm12, %v411_v11, %v410_v14 }
 0x123   :  { %v416_v16 = vsel %vm1175_vm13, %v414_v13, %v413_v15  ;;  %v662_v15 = vld [vmem:[%s1172_s9] sm:$0xff] }
 0x124   :  { %v419_v17 = vsel %vm1174_vm14, %v416_v16, -inf  ;;  %681 = vmatpush.msra.mxu2 %v662_v15 }
 0x125   :  { %420 = vmax.xlane.f32.xlu0 %v419_v17 }
 0x186   :  { %v155_v19 = vpop.xlane.xlu2 %154 }
 0x187   :  { %771 = vrcp.f32 %v155_v19  ;;  %v167_v22 = vand.u32 2147483648, %v155_v19  ;;  %vm161_vm15 = vweird.f32 %v155_v19  ;;  %v165_v24 = vand.u32 2147483647, %v155_v19 }
 0x189   :  { %v168_v27 = vor.u32 1.1754944e-38, %v167_v22  ;;  %vm166_vm2 = vcmp.eq.f32.partialorder %v165_v24, 8.507059e+37 }
 0x18d   :  { %v772_v20 = vpop.eup %771 }
 0x18e   :  { %v157_v21 = vmul.f32 %v772_v20, %v155_v19  ;;  %vm162_vm0 = vweird.f32 %v772_v20 }
 0x18f   :  { %vm163_vm1 = vmor %vm161_vm15, %vm162_vm0 }
 0x190   :  { %v158_v23 = vsub.f32 1.0, %v157_v21 }
 0x192   :  { %v159_v25 = vmul.f32 %v772_v20, %v158_v23 }
 0x194   :  { %v160_v28 = vadd.f32 %v772_v20, %v159_v25 }
 0x196   :  { %v164_v29 = vsel %vm163_vm1, %v772_v20, %v160_v28 }
 0x197   :  { %v169_v30 = vsel %vm166_vm2, %v168_v27, %v164_v29 }
 0x198   :  { %v170_v31 = vmul.f32 %v770_v58, %v169_v30  ;;  %v421_v32 = vpop.xlane.xlu0 %420 }
 0x199   :  { %v423_v33 = vrot.slane %v421_v32, 1  ;;  %v424_v34 = vrot.slane %v421_v32, 2  ;;  %v425_v35 = vrot.slane %v421_v32, 3  ;;  %v426_v36 = vrot.slane %v421_v32, 4 }
 0x19a   :  { %688 = vperm.xlu2 %760, %v170_v31   ;;  %704 = vperm.xlu1 %759, %v170_v31   ;;  %v427_v37 = vrot.slane %v421_v32, 5  ;;  %v438_v38 = vsub.f32 %v981_v57, %v421_v32  ;;  %v428_v39 = vrot.slane %v421_v32, 6  ;;  %v429_v40 = vrot.slane %v421_v32, 7 }
 0x19b   :  { %v439_v41 = vsub.f32 %v235_v62, %v423_v33  ;;  %v440_v42 = vsub.f32 %v984_v60, %v424_v34  ;;  %v441_v43 = vsub.f32 %v986_v61, %v425_v35  ;;  %v442_v44 = vsub.f32 %v310_v4, %v426_v36 }
 0x19c   :  { %v446_v45 = vmul.f32 1.442695, %v438_v38  ;;  %v443_v46 = vsub.f32 %v335_v9, %v427_v37  ;;  %v444_v47 = vsub.f32 %v360_v5, %v428_v39  ;;  %v445_v51 = vsub.f32 %v385_v8, %v429_v40 }
 0x19d   :  { %v448_v48 = vmul.f32 1.442695, %v439_v41  ;;  %v450_v49 = vmul.f32 1.442695, %v440_v42  ;;  %v452_v50 = vmul.f32 1.442695, %v441_v43 }
 0x19e   :  { %773 = vpow2.f32 %v446_v45  ;;  %v454_v52 = vmul.f32 1.442695, %v442_v44  ;;  %v456_v53 = vmul.f32 1.442695, %v443_v46  ;;  %v458_v54 = vmul.f32 1.442695, %v444_v47 }
 0x19f   :  { %775 = vpow2.f32 %v448_v48  ;;  %v460_v55 = vmul.f32 1.442695, %v445_v51 }
 0x1a0   :  { %777 = vpow2.f32 %v450_v49 }
 0x1a1   :  { %779 = vpow2.f32 %v452_v50 }
 0x1a2   :  { %781 = vpow2.f32 %v454_v52 }
 0x1a3   :  { %783 = vpow2.f32 %v456_v53 }
 0x1a4   :  { %v1003_v56 = vpop.eup %773  ;;  %785 = vpow2.f32 %v458_v54 }
 0x1a5   :  { %v1005_v57 = vpop.eup %775  ;;  %787 = vpow2.f32 %v460_v55 }
 0x1a6   :  { %v1007_v58 = vpop.eup %777  ;;  %v470_v59 = vrot.slane %v1005_v57, 7 }
 0x1a7   :  { %v1010_v60 = vpop.eup %779  ;;  %v472_v61 = vrot.slane %v1007_v58, 6 }
 0x1a8   :  { %v1013_v62 = vpop.eup %781  ;;  %v471_v63 = vsel %vm397_vm7, %v470_v59, %v1003_v56  ;;  %v474_v0 = vrot.slane %v1010_v60, 5 }
 0x1a9   :  { %v1018_v1 = vpop.eup %783  ;;  %v473_v2 = vsel %vm400_vm8, %v472_v61, %v471_v63  ;;  %v476_v3 = vrot.slane %v1013_v62, 4 }
 0x1aa   :  { %v1022_v4 = vpop.eup %785  ;;  %v475_v5 = vsel %vm403_vm9, %v474_v0, %v473_v2  ;;  %v478_v6 = vrot.slane %v1018_v1, 3 }
 0x1ab   :  { %v1026_v7 = vpop.eup %787  ;;  %v477_v8 = vsel %vm1178_vm10, %v476_v3, %v475_v5  ;;  %v480_v9 = vrot.slane %v1022_v4, 2 }
 0x1ac   :  { %v479_v10 = vsel %vm1177_vm11, %v478_v6, %v477_v8  ;;  %v482_v11 = vrot.slane %v1026_v7, 1 }
 0x1ad   :  { %v481_v12 = vsel %vm1176_vm12, %v480_v9, %v479_v10 }
 0x1ae   :  { %v483_v13 = vsel %vm1175_vm13, %v482_v11, %v481_v12 }
 0x1af   :  { %v485_v14 = vsel %vm1174_vm14, %v483_v13, 0.0 }
 0x1b0   :  { %486 = vadd.xlane.f32.xlu0 %v485_v14 }
 0x1c4   :  { %694 = vperm.xlu0 %758, %v170_v31  }
 0x1cc   :  { %761 = vset.pattern.permute.xlu0 %v832_v18 }
 0x223   :  { %v487_v16 = vpop.xlane.xlu0 %486 }
 0x224   :  { %v489_v17 = vrot.slane %v487_v16, 1  ;;  %v1039_v19 = vrot.slane %v487_v16, 2  ;;  %v1041_v20 = vrot.slane %v487_v16, 3  ;;  %v1043_v21 = vrot.slane %v487_v16, 4 }
 0x225   :  { %789 = vrcp.f32 %v487_v16  ;;  %v515_v18 = vand.u32 2147483648, %v487_v16  ;;  %v1048_v24 = vrot.slane %v487_v16, 5  ;;  %v1052_v26 = vrot.slane %v487_v16, 6 }
 0x226   :  { %791 = vrcp.f32 %v489_v17  ;;  %v528_v22 = vand.u32 2147483647, %v489_v17  ;;  %v530_v23 = vand.u32 2147483648, %v489_v17  ;;  %v1054_v27 = vrot.slane %v487_v16, 7 }
 0x227   :  { %793 = vrcp.f32 %v1039_v19  ;;  %vm509_vm3 = vweird.f32 %v487_v16  ;;  %v513_v28 = vand.u32 2147483647, %v487_v16  ;;  %v516_v31 = vor.u32 1.1754944e-38, %v515_v18 }
 0x228   :  { %795 = vrcp.f32 %v1041_v20  ;;  %vm524_vm4 = vweird.f32 %v489_v17  ;;  %vm539_vm5 = vweird.f32 %v1039_v19  ;;  %vm1058_vm6 = vcmp.eq.f32.partialorder %v528_v22, 8.507059e+37 }
 0x229   :  { %797 = vrcp.f32 %v1043_v21  ;;  %v531_v35 = vor.u32 1.1754944e-38, %v530_v23  ;;  %v543_v36 = vand.u32 2147483647, %v1039_v19  ;;  %v545_v40 = vand.u32 2147483648, %v1039_v19 }
 0x22a   :  { %vm554_vm15 = vweird.f32 %v1041_v20  ;;  %v558_v44 = vand.u32 2147483647, %v1041_v20  ;;  %799 = vrcp.f32 %v1048_v24  ;;  %vm1073_vm1 = vcmp.eq.f32.partialorder %v513_v28, 8.507059e+37 }
 0x22b   :  { %v1050_v25 = vpop.eup %789  ;;  %v560_v51 = vand.u32 2147483648, %v1041_v20  ;;  %801 = vrcp.f32 %v1052_v26  ;;  %vm544_vm10 = vcmp.eq.f32.partialorder %v543_v36, 8.507059e+37  ;;  %v573_v2 = vand.u32 2147483647, %v1043_v21 }
 0x22c   :  { %v792_v29 = vpop.eup %791  ;;  %v505_v30 = vmul.f32 %v1050_v25, %v487_v16  ;;  %vm510_vm0 = vweird.f32 %v1050_v25  ;;  %v546_v6 = vor.u32 1.1754944e-38, %v545_v40  ;;  %v575_v9 = vand.u32 2147483648, %v1043_v21 }
 0x22d   :  { %v794_v32 = vpop.eup %793  ;;  %v520_v33 = vmul.f32 %v792_v29, %v489_v17  ;;  %vm525_vm2 = vweird.f32 %v792_v29  ;;  %vm1082_vm13 = vmor %vm509_vm3, %vm510_vm0  ;;  %803 = vrcp.f32 %v1054_v27  ;;  %v588_v34 = vand.u32 2147483647, %v1048_v24 }
 0x22e   :  { %v796_v37 = vpop.eup %795  ;;  %v506_v38 = vsub.f32 1.0, %v505_v30  ;;  %v535_v39 = vmul.f32 %v794_v32, %v1039_v19  ;;  %vm540_vm14 = vweird.f32 %v794_v32  ;;  %vm526_vm11 = vmor %vm524_vm4, %vm525_vm2  ;;  %v561_v19 = vor.u32 1.1754944e-38, %v560_v51 }
 0x22f   :  { %v1066_v41 = vpop.eup %797  ;;  %v521_v42 = vsub.f32 1.0, %v520_v33  ;;  %v550_v43 = vmul.f32 %v796_v37, %v1041_v20  ;;  %vm555_vm12 = vweird.f32 %v796_v37  ;;  %vm541_vm3 = vmor %vm539_vm5, %vm540_vm14  ;;  %vm569_vm14 = vweird.f32 %v1043_v21 }
 0x230   :  { %v507_v45 = vmul.f32 %v1050_v25, %v506_v38  ;;  %v536_v47 = vsub.f32 1.0, %v535_v39  ;;  %v565_v48 = vmul.f32 %v1066_v41, %v1043_v21  ;;  %v800_v3 = vpop.eup %799  ;;  %vm1101_vm4 = vmor %vm554_vm15, %vm555_vm12  ;;  %vm1111_vm5 = vcmp.eq.f32.partialorder %v573_v2, 8.507059e+37 }
 0x231   :  { %v522_v49 = vmul.f32 %v792_v29, %v521_v42  ;;  %v551_v50 = vsub.f32 1.0, %v550_v43  ;;  %v580_v17 = vmul.f32 %v800_v3, %v1048_v24  ;;  %v802_v18 = vpop.eup %801  ;;  %v576_v21 = vor.u32 1.1754944e-38, %v575_v9 }
 0x232   :  { %v508_v52 = vadd.f32 %v1050_v25, %v507_v45  ;;  %v537_v53 = vmul.f32 %v794_v32, %v536_v47  ;;  %v566_v54 = vsub.f32 1.0, %v565_v48  ;;  %v595_v33 = vmul.f32 %v802_v18, %v1052_v26 }
 0x233   :  { %v523_v59 = vadd.f32 %v792_v29, %v522_v49  ;;  %v552_v61 = vmul.f32 %v796_v37, %v551_v50  ;;  %v581_v28 = vsub.f32 1.0, %v580_v17  ;;  %vm585_vm12 = vweird.f32 %v800_v3 }
 0x234   :  { %v538_v63 = vadd.f32 %v794_v32, %v537_v53  ;;  %v567_v0 = vmul.f32 %v1066_v41, %v566_v54  ;;  %v512_v10 = vsel %vm1082_vm13, %v1050_v25, %v508_v52  ;;  %vm559_vm13 = vcmp.eq.f32.partialorder %v558_v44, 8.507059e+37  ;;  %v627_v53 = vpop.permute.xlu1 %626 }
 0x235   :  { %v527_v5 = vsel %vm526_vm11, %v792_v29, %v523_v59  ;;  %v553_v8 = vadd.f32 %v796_v37, %v552_v61  ;;  %vm570_vm11 = vweird.f32 %v1066_v41  ;;  %v517_v22 = vsel %vm1073_vm1, %v516_v31, %v512_v10 }
 0x236   :  { %v532_v11 = vsel %vm1058_vm6, %v531_v35, %v527_v5  ;;  %v542_v12 = vsel %vm541_vm3, %v794_v32, %v538_v63  ;;  %v568_v16 = vadd.f32 %v1066_v41, %v567_v0  ;;  %v590_v32 = vand.u32 2147483648, %v1048_v24  ;;  %v695_v20 = vpop.permute.xlu0 %694 }
 0x237   :  { %v547_v14 = vsel %vm544_vm10, %v546_v6, %v542_v12  ;;  %v557_v15 = vsel %vm1101_vm4, %v796_v37, %v553_v8  ;;  %v533_v23 = vmul.f32 %v1005_v57, %v532_v11  ;;  %vm1121_vm10 = vmor %vm569_vm14, %vm570_vm11  ;;  %v582_v57 = vmul.f32 %v800_v3, %v581_v28  ;;  %v689_v28 = vpop.permute.xlu2 %688 }
 0x238   :  { %v548_v25 = vmul.f32 %v1007_v58, %v547_v14  ;;  %v562_v29 = vsel %vm559_vm13, %v561_v19, %v557_v15  ;;  %v572_v31 = vsel %vm1121_vm10, %v1066_v41, %v568_v16  ;;  %v518_v58 = vmul.f32 %v1003_v56, %v517_v22 }
 0x239   :  { %vm584_vm6 = vweird.f32 %v1048_v24  ;;  %v596_v35 = vsub.f32 1.0, %v595_v33  ;;  %v563_v36 = vmul.f32 %v1010_v60, %v562_v29  ;;  %v583_v37 = vadd.f32 %v800_v3, %v582_v57  ;;  %v804_v60 = vpop.eup %803 }
 0x23a   :  { %v637_v38 = vrot.slane %v533_v23, 7  ;;  %v639_v39 = vrot.slane %v548_v25, 6  ;;  %v577_v40 = vsel %vm1111_vm5, %v576_v21, %v572_v31  ;;  %vm586_vm15 = vmor %vm584_vm6, %vm585_vm12  ;;  %vm600_vm0 = vweird.f32 %v802_v18 }
 0x23b   :  { %v597_v41 = vmul.f32 %v802_v18, %v596_v35  ;;  %v605_v42 = vand.u32 2147483648, %v1052_v26  ;;  %v587_v43 = vsel %vm586_vm15, %v800_v3, %v583_v37  ;;  %v591_v56 = vor.u32 1.1754944e-38, %v590_v32 }
 0x23c   :  { %v603_v44 = vand.u32 2147483647, %v1052_v26  ;;  %v638_v24 = vsel %vm397_vm7, %v637_v38, %v518_v58  ;;  %vm589_vm1 = vcmp.eq.f32.partialorder %v588_v34, 8.507059e+37  ;;  %vm599_vm2 = vweird.f32 %v1052_v26  ;;  %v658_v14 = vpop.permute.xlu1 %657 }
 0x23d   :  { %v598_v45 = vadd.f32 %v802_v18, %v597_v41  ;;  %v578_v46 = vmul.f32 %v1013_v62, %v577_v40  ;;  %v592_v47 = vsel %vm589_vm1, %v591_v56, %v587_v43  ;;  %vm601_vm3 = vmor %vm599_vm2, %vm600_vm0  ;;  %v640_v48 = vsel %vm400_vm8, %v639_v39, %v638_v24 }
 0x23e   :  { %v606_v50 = vor.u32 1.1754944e-38, %v605_v42  ;;  %v610_v51 = vmul.f32 %v804_v60, %v1054_v27  ;;  %v641_v52 = vrot.slane %v563_v36, 5  ;;  %vm604_vm4 = vcmp.eq.f32.partialorder %v603_v44, 8.507059e+37 }
 0x23f   :  { %v602_v49 = vsel %vm601_vm3, %v802_v18, %v598_v45  ;;  %v593_v54 = vmul.f32 %v1018_v1, %v592_v47  ;;  %v620_v61 = vand.u32 2147483648, %v1054_v27  ;;  %v643_v62 = vrot.slane %v578_v46, 4 }
 0x240   :  { %v607_v55 = vsel %vm604_vm4, %v606_v50, %v602_v49  ;;  %v611_v59 = vsub.f32 1.0, %v610_v51  ;;  %v642_v26 = vsel %vm403_vm9, %v641_v52, %v640_v48  ;;  %vm615_vm7 = vweird.f32 %v804_v60 }
 0x241   :  { %v618_v0 = vand.u32 2147483647, %v1054_v27  ;;  %v608_v2 = vmul.f32 %v1022_v4, %v607_v55  ;;  %vm1191_vm8 = vcmask 1044484   ;;  %vm614_vm11 = vweird.f32 %v1054_v27  ;;  %v654_v4 = vld [vmem:[%s1171_s8] sm:$0xff]  ;;  %s836_s8 = smov [#allocation3]  }
 0x242   :  { %v612_v63 = vmul.f32 %v804_v60, %v611_v59  ;;  %v644_v3 = vsel %vm1191_vm8, %v643_v62, %v642_v26  ;;  %v645_v6 = vrot.slane %v593_v54, 3  ;;  %vm616_vm13 = vmor %vm614_vm11, %vm615_vm7  ;;  %v621_v1 = vor.u32 1.1754944e-38, %v620_v61  ;;  %s719_s16 = sshll.u32 %s836_s8, 4  ;;  %s720_s16 = int_to_ptr.vmem [resolvable:$true] %s719_s16 }
 0x243   :  { %vm619_vm14 = vcmp.eq.f32.partialorder %v618_v0, 8.507059e+37  ;;  %vm1192_vm9 = vcmask 1045509   ;;  %v647_v11 = vrot.slane %v608_v2, 2  ;;  %vm1193_vm5 = vcmask 1046534  }
 0x244   :  { %v613_v5 = vadd.f32 %v804_v60, %v612_v63  ;;  %v646_v9 = vsel %vm1192_vm9, %v645_v6, %v644_v3  ;;  %vm1194_vm10 = vcmask 1047559   ;;  %v660_v16 = vmul.f32 %v658_v14, %v654_v4 }
 0x245   :  { %v648_v13 = vsel %vm1193_vm5, %v647_v11, %v646_v9  ;;  %vm1195_vm12 = vcmask 64512  }
 0x246   :  { %v617_v8 = vsel %vm616_vm13, %v804_v60, %v613_v5  ;;  %vm1196_vm6 = vmmov %vm1195_vm12 }
 0x247   :  { %v622_v10 = vsel %vm619_vm14, %v621_v1, %v617_v8 }
 0x248   :  { %v623_v12 = vmul.f32 %v1026_v7, %v622_v10  ;;  %v705_v7 = vpop.permute.xlu1 %704 }
 0x24a   :  { %v649_v15 = vrot.slane %v623_v12, 1 }
 0x24c   :  { %v650_v27 = vsel %vm1194_vm10, %v649_v15, %v648_v13 }
 0x24d   :  { %v652_v17 = vmul.f32 %v650_v27, %v627_v53 }
 0x24f   :  { %v661_v19 = vadd.f32 %v660_v16, %v652_v17 }
 0x251   :  { %750 = vmatmul.msk.f32.vlgmr.msra.gmra.mxu2 %vm1195_vm12, %v661_v19 }
 0x2d4   :  { %v683_v18 = vpop.f32.mrf.mxu2 }
 0x2d5   :  { %v697_v22 = vmul.f32 %v695_v20, %v683_v18  ;;  %v707_v23 = vmul.f32 %v705_v7, %v683_v18  ;;  %v691_v29 = vmul.f32 %v689_v28, %v683_v18 }
 0x2d7   :  { %699 = vrot.lane.b32.xlu1 %v697_v22, %s834_s15 }
 0x2df   :  { %709 = vrot.lane.b32.xlu1 %v707_v23, %s835_s1 }
 0x349   :  { %v700_v25 = vpop.permute.xlu1 %699 }
 0x34a   :  { %v702_v30 = vadd.f32 %v700_v25, %v691_v29 }
 0x351   :  { %v710_v21 = vpop.permute.xlu1 %709 }
 0x352   :  { %v712_v32 = vadd.f32 %v710_v21, %v702_v30 }
 0x354   :  { %713 = vst.msk [vmem:[#allocation3] sm:$0xff] %vm1196_vm6, %v712_v32 }
 0x355   :  { %724 = dma.vmem_to_hbm [thread:$0]  %s720_s16, 128, %s722_s0, [#allocation4]  }
 0x356   :  { %829 = dma.done.wait [#allocation4], 128  }
 0x357   :  { %830 = vsyncadd [#allocation4], 4294967168 }
 0x358   :  { %729 = vsyncpa [#allocation4], 1 }

</bundles_post_ra>
